<compile_context>
chip_gen: v6e
topology: v6e:2x2x1
jax: 0.10.0
libtpu: 0.0.40
codegen_flags: <defaults>
</compile_context>

<pallas_src>
import math

import numpy as np
import jax
import jax.numpy as jnp
from jax import lax
from jax.experimental import pallas as pl
from jax.experimental.pallas import tpu as pltpu  # noqa: F401  (TPU backend)

# Problem sizes (small, consistent with the module's forward).
B = 2          # batch
S = 8          # sequence length
E = 32         # dEmbedding
H = 4          # nHeads
DH = E // H    # dHeads
R = B * H * S  # rows of the block-diagonal attention problem (= 64)

# Layout of the packed parameter/constant input (lane-dense, 128 lanes).
PACK_COLS = 4 * E          # 128
PACK_M_ROW = 40            # merge matrix rows start (8-aligned)
PACK_C_ROW = 56            # 64-row constant block start (8-aligned)
PACK_ROWS = PACK_C_ROW + R  # 120


def _build_trace_time_constants():
    """Constant 0/1 gather, head-mask, merge matrices and the additive batch
    mask, computed once at trace time with numpy (review item 1/2/3)."""
    rows = np.arange(R)
    b_of = rows // (H * S)          # batch of block-diag row
    h_of = (rows // S) % H          # head of block-diag row
    s_of = rows % S                 # query position of block-diag row

    # gather @ q replicates each batch's q rows H times: (R, B*S)
    gather = np.zeros((R, B * S), np.float32)
    gather[rows, b_of * S + s_of] = 1.0

    # keep only the embedding columns belonging to this row's head: (R, E)
    head_mask = (h_of[:, None] == (np.arange(E)[None, :] // DH)).astype(np.float32)

    # additive bias: 0 for same-batch key columns, -1e30 otherwise: (R, B*S)
    same_batch = b_of[:, None] == (np.arange(B * S)[None, :] // S)
    neg_bias = np.where(same_batch, 0.0, -1e30).astype(np.float32)

    # merge heads: attn[b*S+s, :] = sum_h full_masked[(b*H+h)*S+s, :]: (B*S, R)
    merge = np.zeros((B * S, R), np.float32)
    out_rows = np.arange(B * S)
    for h in range(H):
        merge[out_rows, ((out_rows // S) * H + h) * S + (out_rows % S)] = 1.0

    return gather, head_mask, neg_bias, merge


_GATHER, _HEAD_MASK, _NEG_BIAS, _MERGE = _build_trace_time_constants()


def pack_params(w_in_t, b_in, w_out_t, b_out):
    """One-time parameter transform: pre-scale the q projection by 1/sqrt(DH)
    and pack weights, biases and all constant matrices into a single
    lane-dense (120, 128) block (one DMA instead of four+)."""
    w_in_np = np.array(w_in_t, dtype=np.float32)      # (E, 3E)
    b_in_np = np.array(b_in, dtype=np.float32)        # (3E,)
    scale = 1.0 / math.sqrt(DH)
    w_in_np[:, :E] *= scale                           # fold score scaling into q
    b_in_np[:E] *= scale

    pack = np.zeros((PACK_ROWS, PACK_COLS), np.float32)
    pack[:E, :3 * E] = w_in_np                         # rows 0..31, cols 0..95
    pack[E, :3 * E] = b_in_np                          # row 32,    cols 0..95
    pack[:E, 3 * E:] = np.array(w_out_t, dtype=np.float32)   # cols 96..127
    pack[E, 3 * E:] = np.array(b_out, dtype=np.float32)

    pack[PACK_M_ROW:PACK_M_ROW + B * S, :R] = _MERGE                     # (16, 64)
    pack[PACK_C_ROW:PACK_C_ROW + R, :E] = _HEAD_MASK                     # (64, 32)
    pack[PACK_C_ROW:PACK_C_ROW + R, E:E + B * S] = _GATHER               # (64, 16)
    pack[PACK_C_ROW:PACK_C_ROW + R, E + B * S:E + 2 * B * S] = _NEG_BIAS  # (64, 16)
    return jnp.asarray(pack)


def _self_attention_kernel(x_ref, pk_ref, o_ref):
    """Fully fused self-attention, single invocation (no grid).

    x_ref:  (B*S, E)          VMEM  batch folded into rows
    pk_ref: (120, 128)        VMEM  packed weights/biases + constant matrices
    o_ref:  (B*S, E)          VMEM  output (reshaped to (B, S, E) in wrapper)
    """
    x = x_ref[...]                                                     # (16, 32)

    # ---- packed parameters (static ref slices, no extra DMAs) -------------
    w_in = pk_ref[0:E, 0:3 * E]                                        # (32, 96)
    b_in = pk_ref[E:E + 1, 0:3 * E]                                    # (1, 96)
    w_out = pk_ref[0:E, 3 * E:4 * E]                                   # (32, 32)
    b_out = pk_ref[E:E + 1, 3 * E:4 * E]                               # (1, 32)

    # ---- packed trace-time constants ---------------------------------------
    merge = pk_ref[PACK_M_ROW:PACK_M_ROW + B * S, 0:R]                 # (16, 64)
    head_mask = pk_ref[PACK_C_ROW:PACK_C_ROW + R, 0:E]                 # (64, 32)
    gather = pk_ref[PACK_C_ROW:PACK_C_ROW + R, E:E + B * S]            # (64, 16)
    neg_bias = pk_ref[PACK_C_ROW:PACK_C_ROW + R,
                      E + B * S:E + 2 * B * S]                         # (64, 16)

    # ---- in_proj for both batch elements in one MXU pass -------------------
    # (q columns of w_in / b_in are pre-scaled by 1/sqrt(DH) in pack_params.)
    qkv = jnp.dot(x, w_in, preferred_element_type=jnp.float32) + b_in  # (16, 96)
    q = qkv[:, 0:E]
    k = qkv[:, E:2 * E]
    v = qkv[:, 2 * E:3 * E]

    # ---- block-diagonal multi-head attention, rows ordered (batch,head,seq) -
    q_bd = jnp.dot(gather, q, preferred_element_type=jnp.float32) * head_mask  # (64, 32)
    scores = lax.dot_general(q_bd, k, (((1,), (1,)), ((), ())),
                             preferred_element_type=jnp.float32)       # (64, 16)
    scores = scores + neg_bias          # cross-batch key columns -> -1e30

    m = jnp.max(scores, axis=-1, keepdims=True)                        # (64, 1)
    p = jnp.exp(scores - m)             # masked columns underflow to exactly 0
    denom = jnp.sum(p, axis=-1, keepdims=True)
    p = p * pl.reciprocal(denom, approx=False)

    full = jnp.dot(p, v, preferred_element_type=jnp.float32) * head_mask  # (64, 32)
    attn = jnp.dot(merge, full, preferred_element_type=jnp.float32)       # (16, 32)

    # ---- out_proj -----------------------------------------------------------
    out = jnp.dot(attn, w_out, preferred_element_type=jnp.float32) + b_out
    o_ref[...] = out.astype(o_ref.dtype)


@jax.jit
def self_attention(x, pack):
    """x: (B, S, E); pack: packed parameters/constants from pack_params."""
    x2d = x.reshape(B * S, E)                      # free reshape in XLA
    out = pl.pallas_call(
        _self_attention_kernel,
        out_shape=jax.ShapeDtypeStruct((B * S, E), x.dtype),
        in_specs=[
            pl.BlockSpec((B * S, E), lambda: (0, 0)),
            pl.BlockSpec((PACK_ROWS, PACK_COLS), lambda: (0, 0)),
        ],
        out_specs=pl.BlockSpec((B * S, E), lambda: (0, 0)),
    )(x2d, pack)
    return out.reshape(B, S, E)                    # free reshape in XLA


def self_attention_ref(x, w_in_t, b_in, w_out_t, b_out):
    """Pure-JAX reference for correctness checking (intended math, non-causal)."""
    qkv = x @ w_in_t + b_in                      # (B, S, 3E)
    q, k, v = jnp.split(qkv, 3, axis=-1)         # each (B, S, E)

    def split_heads(t):
        return t.reshape(B, S, H, DH).transpose(0, 2, 1, 3)  # (B, H, S, DH)

    q, k, v = split_heads(q), split_heads(k), split_heads(v)
    w = jnp.einsum("bhqd,bhkd->bhqk", q, k) / math.sqrt(DH)
    w = jax.nn.softmax(w, axis=-1)
    o = jnp.einsum("bhqk,bhkd->bhqd", w, v)      # (B, H, S, DH)
    o = o.transpose(0, 2, 1, 3).reshape(B, S, E)
    return o @ w_out_t + b_out


if __name__ == "__main__":
    key = jax.random.PRNGKey(0)
    kx, k1, k2, k3, k4 = jax.random.split(key, 5)

    # Deterministic parameter init (PyTorch Linear-style uniform bounds).
    lim_in = 1.0 / math.sqrt(E)
    w_in = jax.random.uniform(k1, (3 * E, E), jnp.float32, -lim_in, lim_in)  # torch (out,in)
    b_in = jax.random.uniform(k2, (3 * E,), jnp.float32, -lim_in, lim_in)
    w_out = jax.random.uniform(k3, (E, E), jnp.float32, -lim_in, lim_in)
    b_out = jax.random.uniform(k4, (E,), jnp.float32, -lim_in, lim_in)

    # Kernel consumes transposed weights: y = x @ W^T + b.
    w_in_t = w_in.T     # (E, 3E)
    w_out_t = w_out.T   # (E, E)

    x = jax.random.normal(kx, (B, S, E), jnp.float32)

    # One-time parameter transform (pre-scale q, pack weights + constants).
    pack = pack_params(w_in_t, b_in, w_out_t, b_out)

    out = jax.block_until_ready(self_attention(x, pack))

    ref = self_attention_ref(x, w_in_t, b_in, w_out_t, b_out)
    assert out.shape == (B, S, E)
    # Structural/indexing bugs produce O(0.1) errors; this tolerance only
    # absorbs f32 matmul rounding differences between Mosaic and XLA.
    assert jnp.allclose(out, ref, atol=2e-3, rtol=2e-3), "mismatch vs reference"

    print("KERNEL_OK")
</pallas_src>

<mosaic_0001>
module attributes {stable_mosaic.version = 11 : i64} {
  func.func @_self_attention_kernel(%arg0: memref<16x32xf32, #tpu.memory_space<vmem>>, %arg1: memref<120x128xf32, #tpu.memory_space<vmem>>, %arg2: memref<16x32xf32, #tpu.memory_space<vmem>>) attributes {dimension_semantics = [], scalar_prefetch = 0 : i64, scratch_operands = 0 : i64, tpu.core_type = #tpu.core_type<tc>} {
    %c0 = arith.constant 0 : index
    %c0_0 = arith.constant 0 : index
    %0 = vector.load %arg0[%c0, %c0_0] : memref<16x32xf32, #tpu.memory_space<vmem>>, vector<16x32xf32>
    %c0_1 = arith.constant 0 : index
    %c0_2 = arith.constant 0 : index
    %1 = vector.load %arg1[%c0_1, %c0_2] : memref<120x128xf32, #tpu.memory_space<vmem>>, vector<32x96xf32>
    %c32 = arith.constant 32 : index
    %c0_3 = arith.constant 0 : index
    %2 = vector.load %arg1[%c32, %c0_3] : memref<120x128xf32, #tpu.memory_space<vmem>>, vector<1x96xf32>
    %c0_4 = arith.constant 0 : index
    %c96 = arith.constant 96 : index
    %3 = vector.load %arg1[%c0_4, %c96] : memref<120x128xf32, #tpu.memory_space<vmem>>, vector<32x32xf32>
    %c32_5 = arith.constant 32 : index
    %c96_6 = arith.constant 96 : index
    %4 = vector.load %arg1[%c32_5, %c96_6] : memref<120x128xf32, #tpu.memory_space<vmem>>, vector<1x32xf32>
    %c40 = arith.constant 40 : index
    %c0_7 = arith.constant 0 : index
    %5 = vector.load %arg1[%c40, %c0_7] : memref<120x128xf32, #tpu.memory_space<vmem>>, vector<16x64xf32>
    %c56 = arith.constant 56 : index
    %c0_8 = arith.constant 0 : index
    %6 = vector.load %arg1[%c56, %c0_8] : memref<120x128xf32, #tpu.memory_space<vmem>>, vector<64x32xf32>
    %c56_9 = arith.constant 56 : index
    %c32_10 = arith.constant 32 : index
    %7 = vector.load %arg1[%c56_9, %c32_10] : memref<120x128xf32, #tpu.memory_space<vmem>>, vector<64x16xf32>
    %c56_11 = arith.constant 56 : index
    %c48 = arith.constant 48 : index
    %8 = vector.load %arg1[%c56_11, %c48] : memref<120x128xf32, #tpu.memory_space<vmem>>, vector<64x16xf32>
    %cst = arith.constant dense<0.000000e+00> : vector<16x96xf32>
    %9 = tpu.matmul %0, %1, %cst {dimension_numbers = #tpu.dot_dimension_numbers<[1], [0], [0], [1], [0, 0, 1, 1], [], []>} : vector<16x32xf32>, vector<32x96xf32>, vector<16x96xf32> -> vector<16x96xf32>
    %10 = vector.broadcast %2 : vector<1x96xf32> to vector<16x96xf32>
    %11 = arith.addf %9, %10 : vector<16x96xf32>
    %12 = vector.extract_strided_slice %11 {offsets = [0, 0], sizes = [16, 32], strides = [1, 1]} : vector<16x96xf32> to vector<16x32xf32>
    %13 = vector.extract_strided_slice %11 {offsets = [0, 32], sizes = [16, 32], strides = [1, 1]} : vector<16x96xf32> to vector<16x32xf32>
    %14 = vector.extract_strided_slice %11 {offsets = [0, 64], sizes = [16, 32], strides = [1, 1]} : vector<16x96xf32> to vector<16x32xf32>
    %cst_12 = arith.constant dense<0.000000e+00> : vector<64x32xf32>
    %15 = tpu.matmul %7, %12, %cst_12 {dimension_numbers = #tpu.dot_dimension_numbers<[1], [0], [0], [1], [0, 0, 1, 1], [], []>} : vector<64x16xf32>, vector<16x32xf32>, vector<64x32xf32> -> vector<64x32xf32>
    %16 = arith.mulf %15, %6 : vector<64x32xf32>
    %cst_13 = arith.constant dense<0.000000e+00> : vector<64x16xf32>
    %17 = tpu.matmul %16, %13, %cst_13 {dimension_numbers = #tpu.dot_dimension_numbers<[1], [1], [0], [0], [0, 0, 1, 0], [], []>} : vector<64x32xf32>, vector<16x32xf32>, vector<64x16xf32> -> vector<64x16xf32>
    %18 = arith.addf %17, %8 : vector<64x16xf32>
    %cst_14 = arith.constant dense<0xFF800000> : vector<64xf32>
    %19 = vector.multi_reduction <maximumf>, %18, %cst_14 [1] : vector<64x16xf32> to vector<64xf32>
    %20 = vector.shape_cast %19 : vector<64xf32> to vector<64x1xf32>
    %21 = vector.broadcast %20 : vector<64x1xf32> to vector<64x16xf32>
    %22 = arith.subf %18, %21 : vector<64x16xf32>
    %23 = math.exp %22 : vector<64x16xf32>
    %cst_15 = arith.constant dense<0.000000e+00> : vector<64xf32>
    %24 = vector.multi_reduction <add>, %23, %cst_15 [1] : vector<64x16xf32> to vector<64xf32>
    %25 = vector.shape_cast %24 : vector<64xf32> to vector<64x1xf32>
    %26 = tpu.reciprocal %25 : vector<64x1xf32> -> vector<64x1xf32>
    %27 = vector.broadcast %26 : vector<64x1xf32> to vector<64x16xf32>
    %28 = arith.mulf %23, %27 : vector<64x16xf32>
    %cst_16 = arith.constant dense<0.000000e+00> : vector<64x32xf32>
    %29 = tpu.matmul %28, %14, %cst_16 {dimension_numbers = #tpu.dot_dimension_numbers<[1], [0], [0], [1], [0, 0, 1, 1], [], []>} : vector<64x16xf32>, vector<16x32xf32>, vector<64x32xf32> -> vector<64x32xf32>
    %30 = arith.mulf %29, %6 : vector<64x32xf32>
    %cst_17 = arith.constant dense<0.000000e+00> : vector<16x32xf32>
    %31 = tpu.matmul %5, %30, %cst_17 {dimension_numbers = #tpu.dot_dimension_numbers<[1], [0], [0], [1], [0, 0, 1, 1], [], []>} : vector<16x64xf32>, vector<64x32xf32>, vector<16x32xf32> -> vector<16x32xf32>
    %cst_18 = arith.constant dense<0.000000e+00> : vector<16x32xf32>
    %32 = tpu.matmul %31, %3, %cst_18 {dimension_numbers = #tpu.dot_dimension_numbers<[1], [0], [0], [1], [0, 0, 1, 1], [], []>} : vector<16x32xf32>, vector<32x32xf32>, vector<16x32xf32> -> vector<16x32xf32>
    %33 = vector.broadcast %4 : vector<1x32xf32> to vector<16x32xf32>
    %34 = arith.addf %32, %33 : vector<16x32xf32>
    %c0_19 = arith.constant 0 : index
    %c0_20 = arith.constant 0 : index
    %35 = vector.load %arg2[%c0_19, %c0_20] : memref<16x32xf32, #tpu.memory_space<vmem>>, vector<16x32xf32>
    tpu.vector_store %arg2[%c0_19, %c0_20], %34 {strides = array<i32>} : memref<16x32xf32, #tpu.memory_space<vmem>>, vector<16x32xf32>,
    return
  }
}

</mosaic_0001>

<bundles_post_ra>
// kernel: self_attention.1
= control target key start
LH: loop header
LB: loop body
LE: loop exit
PB: predicated region body
PF: predicated region fallthrough
CT: control target
= control target key end

     0   :  { %7 = vsyncpa [#allocation3], 0  ;;  %s1364_s0 = inlined_call_operand.hbm [shape: f32[16,32], index: 0, kind: input, shape index: {}]   ;;  %s1365_s1 = inlined_call_operand.hbm [shape: f32[120,128], index: 1, kind: input, shape index: {}]   ;;  %s1366_s2 = inlined_call_operand.hbm [shape: f32[16,32], index: 2, kind: output, shape index: {}]  }
   0x1   :  { %8 = vsyncpa [#allocation6], 0 }
   0x2   :  { %9 = vsyncpa [#allocation4], 0  ;;  %s1175_s9 = smov [#allocation2]  }
   0x3   :  { %s15_s10 = sshll.u32 %s1175_s9, 4  ;;  %s16_s10 = int_to_ptr.vmem [resolvable:$true] %s15_s10 }
   0x4   :  { %s1117_s11 = scalar_lea.vmem %s16_s10, 256  ;;  %p1122_p1 = scmp.lt.s32.totalorder %s16_s10, %s16_s10 }
   0x5   :  { %p1118_p0 = scmp.ne.s32.totalorder %s16_s10, %s1117_s11  ;;  %p1123_p2 = scmp.lt.s32.totalorder %s1117_s11, %s1117_s11 }
   0x7   :  { %p1124_p3 = por %p1123_p2, %p1122_p1 }
   0x9   :  { %p1125_p4 = pnand %p1124_p3, %p1118_p0 }
   0xb   :  { %1128 = shalt.err (!%p1125_p4)
}
   0xc   :  { %s1176_s12 = smov 128   ;;  %s1177_s13 = smov 8  }
   0xd   :  { %21 = dma.hbm_to_vmem [thread:$0]  %s1364_s0, 256, %s16_s10, [#allocation3], %s1176_s12, %s1176_s12, %s1177_s13  }
   0xe   :  { %s1178_s16 = smov [#allocation5]  }
   0xf   :  { %s27_s17 = sshll.u32 %s1178_s16, 4  ;;  %s28_s17 = int_to_ptr.vmem [resolvable:$true] %s27_s17 }
  0x10   :  { %s1137_s18 = scalar_lea.vmem %s28_s17, 1920  ;;  %p1142_p6 = scmp.lt.s32.totalorder %s28_s17, %s28_s17 }
  0x11   :  { %p1138_p5 = scmp.ne.s32.totalorder %s28_s17, %s1137_s18  ;;  %p1143_p7 = scmp.lt.s32.totalorder %s1137_s18, %s1137_s18 }
  0x13   :  { %p1144_p8 = por %p1143_p7, %p1142_p6 }
  0x15   :  { %p1145_p9 = pnand %p1144_p8, %p1138_p5 }
  0x17   :  { %1148 = shalt.err (!%p1145_p9)
}
  0x18   :  { %33 = dma.hbm_to_vmem [thread:$0]  %s1365_s1, 1920, %s28_s17, [#allocation6], %s1176_s12, %s1176_s12, %s1177_s13  }
  0x19   :  { %1169 = dma.done.wait [#allocation3], 256  }
  0x1a   :  { %1170 = vsyncadd [#allocation3], 4294967040 }
  0x1b   :  { %1171 = dma.done.wait [#allocation6], 1920  }
  0x1c   :  { %1172 = vsyncadd [#allocation6], 4294965376  ;;  %vm61_vm0 = vcmask 261120   ;;  %v1211_v0 = vld [vmem:[#allocation5 + $0x18] sm:$0xff]  ;;  %v1213_v1 = vld [vmem:[#allocation5 + $0x10] sm:$0xff]  ;;  %s1179_s0 = smov 96  }
  0x1d   :  { %979 = vmatprep.subr.mxu0 %v1211_v0  ;;  %v40_v2 = vld [vmem:[#allocation2] sm:$0xff]  ;;  %v1217_v3 = vld [vmem:[#allocation5 + $0x8] sm:$0xff]  ;;  %v1220_v4 = vld [vmem:[#allocation5 + $0x38] sm:$0xff]  ;;  %vm167_vm1 = vcmask 130048   ;;  %s1180_s1 = smov 80   ;;  %s1181_s21 = smov 64  }
  0x1e   :  { %980 = vmatpush3.msra.mxu0 %v1211_v0  ;;  %987 = vmatprep.mubr.msk.f32.mxu0 %vm61_vm0, %v40_v2  ;;  %v1222_v5 = vld [vmem:[#allocation5 + $0x48] sm:$0xff]  ;;  %v1228_v6 = vld [vmem:[#allocation5] sm:$0xff]  ;;  %v1235_v8 = vld [vmem:[#allocation5 + $0x50] sm:$0xff]  ;;  %vm691_vm2 = vcmask 523264   ;;  %s1182_s22 = smov 32   ;;  %s1183_s23 = smov [#allocation7]  }
  0x1f   :  { %981 = vmatprep.subr.mxu0 %v1213_v1  ;;  %151 = vrot.lane.b32.xlu0 %v1220_v4, %s1179_s0  ;;  %v1232_v7 = vld [vmem:[#allocation5 + $0x40] sm:$0xff]  ;;  %v41_v9 = vld [vmem:[#allocation2 + $0x8] sm:$0xff]  ;;  %v1253_v12 = vld [vmem:[#allocation5 + $0x68] sm:$0xff]  ;;  %s881_s24 = sshll.u32 %s1183_s23, 4  ;;  %s882_s24 = int_to_ptr.vmem [resolvable:$true] %s881_s24 }
  0x20   :  { %982 = vmatpush3.msra.mxu0 %v1213_v1  ;;  %155 = vrot.lane.b32.xlu1 %v1222_v5, %s1179_s0  ;;  %v1244_v10 = vld [vmem:[#allocation5 + $0x58] sm:$0xff]  ;;  %v1247_v11 = vld [vmem:[#allocation5 + $0x60] sm:$0xff]  ;;  %v1255_v13 = vld [vmem:[#allocation5 + $0x70] sm:$0xff]  ;;  %s1149_s25 = scalar_lea.vmem %s882_s24, 256  ;;  %p1154_p11 = scmp.lt.s32.totalorder %s882_s24, %s882_s24 }
  0x21   :  { %983 = vmatprep.subr.mxu0 %v1217_v3  ;;  %v1262_v15 = vld [vmem:[#allocation5 + $0x20] ss:$0 sm:$0xff]  ;;  %p1150_p10 = scmp.ne.s32.totalorder %s882_s24, %s1149_s25  ;;  %p1155_p12 = scmp.lt.s32.totalorder %s1149_s25, %s1149_s25 }
  0x22   :  { %984 = vmatpush3.msra.mxu0 %v1217_v3 }
  0x23   :  { %985 = vmatprep.subr.mxu0 %v1228_v6  ;;  %153 = vrot.lane.b32.xlu0 %v1232_v7, %s1179_s0  ;;  %p1156_p13 = por %p1155_p12, %p1154_p11 }
  0x24   :  { %986 = vmatpush3.msra.mxu0 %v1228_v6  ;;  %157 = vrot.lane.b32.xlu1 %v1235_v8, %s1179_s0 }
  0x25   :  { %988 = vmatmul.mubr.msk.f32.vlgmr.msra.gmra.mxu0 %vm61_vm0, %v41_v9  ;;  %p1157_p0 = pnand %p1156_p13, %p1150_p10 }
  0x27   :  { %159 = vrot.lane.b32.xlu0 %v1244_v10, %s1179_s0 }
  0x28   :  { %161 = vrot.lane.b32.xlu1 %v1247_v11, %s1179_s0 }
  0x2b   :  { %163 = vrot.lane.b32.xlu0 %v1253_v12, %s1179_s0 }
  0x2c   :  { %165 = vrot.lane.b32.xlu1 %v1255_v13, %s1179_s0 }
  0x91   :  { %v152_v14 = vpop.permute.xlu0 %151 }
  0x92   :  { %994 = vmatprep.mubr.msk.f32.mxu1 %vm167_vm1, %v152_v14  ;;  %v156_v16 = vpop.permute.xlu1 %155 }
  0x95   :  { %v154_v21 = vpop.permute.xlu0 %153 }
  0x96   :  { %v158_v22 = vpop.permute.xlu1 %157 }
  0x99   :  { %v160_v23 = vpop.permute.xlu0 %159 }
  0x9a   :  { %v162_v24 = vpop.permute.xlu1 %161 }
  0x9d   :  { %v164_v25 = vpop.permute.xlu0 %163 }
  0x9e   :  { %v166_v26 = vpop.permute.xlu1 %165 }
  0xe5   :  { %v989_v17 = vpop.f32.mrf.mxu0 }
  0xe6   :  { %v1265_v18 = vadd.f32 %v989_v17, %v1262_v15 }
  0xe7   :  { %v134_v19 = vpop.f32.mrf.mxu0 }
  0xe8   :  { %v1268_v20 = vadd.f32 %v1262_v15, %v134_v19  ;;  %301 = vrot.lane.b32.xlu0 %v1265_v18, %s1179_s0  ;;  %990 = vmatprep.subr.mxu1 %v1265_v18 }
  0xe9   :  { %991 = vmatpush3.msra.mxu1 %v1265_v18 }
  0xea   :  { %299 = vrot.lane.b32.xlu1 %v1268_v20, %s1179_s0  ;;  %992 = vmatprep.subr.mxu1 %v1268_v20 }
  0xeb   :  { %993 = vmatpush3.msra.mxu1 %v1268_v20 }
  0xec   :  { %995 = vmatmul.mubr.msk.f32.vlgmr.msra.gmra.mxu1 %vm167_vm1, %v154_v21  ;;  %303 = vrot.lane.b32.xlu0 %v1220_v4, %s1180_s1 }
  0xed   :  { %997 = vmatprep.mubr.msk.f32.mxu1 %vm167_vm1, %v156_v16 }
  0xee   :  { %305 = vrot.lane.b32.xlu1 %v1232_v7, %s1180_s1 }
  0xf0   :  { %998 = vmatmul.mubr.msk.f32.gmra.mxu1 %vm167_vm1, %v158_v22  ;;  %307 = vrot.lane.b32.xlu0 %v1222_v5, %s1180_s1 }
  0xf1   :  { %1000 = vmatprep.mubr.msk.f32.mxu1 %vm167_vm1, %v160_v23 }
  0xf2   :  { %309 = vrot.lane.b32.xlu1 %v1235_v8, %s1180_s1 }
  0xf4   :  { %1001 = vmatmul.mubr.msk.f32.gmra.mxu1 %vm167_vm1, %v162_v24  ;;  %311 = vrot.lane.b32.xlu0 %v1244_v10, %s1180_s1 }
  0xf5   :  { %1003 = vmatprep.mubr.msk.f32.mxu1 %vm167_vm1, %v164_v25 }
  0xf6   :  { %313 = vrot.lane.b32.xlu1 %v1247_v11, %s1180_s1 }
  0xf8   :  { %1004 = vmatmul.mubr.msk.f32.gmra.mxu1 %vm167_vm1, %v166_v26  ;;  %315 = vrot.lane.b32.xlu0 %v1253_v12, %s1180_s1 }
  0xfa   :  { %317 = vrot.lane.b32.xlu1 %v1255_v13, %s1180_s1 }
 0x15a   :  { %v302_v27 = vpop.permute.xlu0 %301 }
 0x15b   :  { %1006 = vmatprep.subr.msk.mxu0 %vm61_vm0, %v302_v27 }
 0x15c   :  { %1007 = vmatpush3.xpose.msk.msra.mxu0 %vm61_vm0, %v302_v27  ;;  %v300_v28 = vpop.permute.xlu1 %299 }
 0x15d   :  { %1008 = vmatprep.subr.msk.mxu0 %vm61_vm0, %v300_v28 }
 0x15e   :  { %v304_v45 = vpop.permute.xlu0 %303 }
 0x160   :  { %1009 = vmatpush3.xpose.msk.msra.mxu0 %vm61_vm0, %v300_v28  ;;  %v306_v46 = vpop.permute.xlu1 %305 }
 0x162   :  { %v308_v48 = vpop.permute.xlu0 %307 }
 0x164   :  { %v310_v51 = vpop.permute.xlu1 %309 }
 0x166   :  { %v312_v57 = vpop.permute.xlu0 %311 }
 0x168   :  { %v314_v59 = vpop.permute.xlu1 %313 }
 0x16a   :  { %v316_v14 = vpop.permute.xlu0 %315 }
 0x16c   :  { %v318_v21 = vpop.permute.xlu1 %317 }
 0x1ac   :  { %v996_v29 = vpop.f32.mrf.mxu1 }
 0x1ad   :  { %v290_v32 = vmul.f32 %v996_v29, %v1232_v7 }
 0x1ae   :  { %v250_v30 = vpop.f32.mrf.mxu1 }
 0x1af   :  { %v289_v31 = vmul.f32 %v250_v30, %v1220_v4 }
 0x1b0   :  { %v999_v33 = vpop.f32.mrf.mxu1 }
 0x1b1   :  { %1010 = vmatprep.mubr.msk.f32.mxu0 %vm61_vm0, %v289_v31  ;;  %v292_v36 = vmul.f32 %v999_v33, %v1235_v8 }
 0x1b2   :  { %v260_v34 = vpop.f32.mrf.mxu1  ;;  %1011 = vmatmul.mubr.msk.f32.vlgmr.msra.gmra.mxu0 %vm61_vm0, %v290_v32 }
 0x1b3   :  { %v291_v35 = vmul.f32 %v260_v34, %v1222_v5 }
 0x1b4   :  { %v1002_v37 = vpop.f32.mrf.mxu1 }
 0x1b5   :  { %1013 = vmatprep.mubr.msk.f32.mxu0 %vm61_vm0, %v291_v35  ;;  %v294_v38 = vmul.f32 %v1002_v37, %v1247_v11 }
 0x1b6   :  { %v270_v39 = vpop.f32.mrf.mxu1  ;;  %1014 = vmatmul.mubr.msk.f32.gmra.mxu0 %vm61_vm0, %v292_v36 }
 0x1b7   :  { %v293_v40 = vmul.f32 %v270_v39, %v1244_v10 }
 0x1b8   :  { %v1005_v41 = vpop.f32.mrf.mxu1 }
 0x1b9   :  { %1016 = vmatprep.mubr.msk.f32.mxu0 %vm61_vm0, %v293_v40  ;;  %v296_v42 = vmul.f32 %v1005_v41, %v1255_v13 }
 0x1ba   :  { %v280_v43 = vpop.f32.mrf.mxu1  ;;  %1017 = vmatmul.mubr.msk.f32.gmra.mxu0 %vm61_vm0, %v294_v38 }
 0x1bb   :  { %v295_v44 = vmul.f32 %v280_v43, %v1253_v12 }
 0x1bd   :  { %1019 = vmatprep.mubr.msk.f32.mxu0 %vm61_vm0, %v295_v44 }
 0x1be   :  { %1020 = vmatmul.mubr.msk.f32.gmra.mxu0 %vm61_vm0, %v296_v42 }
 0x272   :  { %v1012_v47 = vpop.f32.mrf.mxu0 }
 0x273   :  { %v427_v49 = vadd.f32 %v1012_v47, %v306_v46 }
 0x274   :  { %v421_v50 = vpop.f32.mrf.mxu0 }
 0x275   :  { %v422_v52 = vadd.f32 %v421_v50, %v304_v45  ;;  %v463_v53 = vsel %vm167_vm1, %v427_v49, -inf }
 0x276   :  { %464 = vmax.xlane.f32.xlu1 %v463_v53  ;;  %v1015_v54 = vpop.f32.mrf.mxu0 }
 0x277   :  { %v460_v55 = vsel %vm167_vm1, %v422_v52, -inf  ;;  %v437_v61 = vadd.f32 %v1015_v54, %v310_v51 }
 0x278   :  { %461 = vmax.xlane.f32.xlu0 %v460_v55  ;;  %v431_v56 = vpop.f32.mrf.mxu0 }
 0x279   :  { %v432_v58 = vadd.f32 %v431_v56, %v308_v48  ;;  %v469_v17 = vsel %vm167_vm1, %v437_v61, -inf }
 0x27a   :  { %v1018_v60 = vpop.f32.mrf.mxu0 }
 0x27b   :  { %v466_v62 = vsel %vm167_vm1, %v432_v58, -inf  ;;  %v447_v16 = vadd.f32 %v1018_v60, %v314_v59 }
 0x27c   :  { %467 = vmax.xlane.f32.xlu0 %v466_v62  ;;  %v441_v63 = vpop.f32.mrf.mxu0 }
 0x27d   :  { %v442_v2 = vadd.f32 %v441_v63, %v312_v57  ;;  %v475_v25 = vsel %vm167_vm1, %v447_v16, -inf }
 0x27e   :  { %v1021_v9 = vpop.f32.mrf.mxu0 }
 0x27f   :  { %v472_v19 = vsel %vm167_vm1, %v442_v2, -inf  ;;  %v457_v24 = vadd.f32 %v1021_v9, %v318_v21 }
 0x280   :  { %470 = vmax.xlane.f32.xlu0 %v469_v17  ;;  %473 = vmax.xlane.f32.xlu1 %v472_v19  ;;  %v451_v22 = vpop.f32.mrf.mxu0 }
 0x281   :  { %v452_v23 = vadd.f32 %v451_v22, %v316_v14  ;;  %v481_v27 = vsel %vm167_vm1, %v457_v24, -inf }
 0x283   :  { %v478_v26 = vsel %vm167_vm1, %v452_v23, -inf }
 0x284   :  { %476 = vmax.xlane.f32.xlu0 %v475_v25  ;;  %479 = vmax.xlane.f32.xlu1 %v478_v26 }
 0x288   :  { %482 = vmax.xlane.f32.xlu0 %v481_v27 }
 0x2ff   :  { %v465_v28 = vpop.xlane.xlu1 %464 }
 0x300   :  { %v485_v29 = vsub.f32 %v427_v49, %v465_v28 }
 0x301   :  { %v462_v30 = vpop.xlane.xlu0 %461 }
 0x302   :  { %v494_v31 = vmul.f32 1.442695, %v485_v29  ;;  %v484_v32 = vsub.f32 %v422_v52, %v462_v30 }
 0x304   :  { %1077 = vpow2.f32 %v494_v31  ;;  %v492_v33 = vmul.f32 1.442695, %v484_v32 }
 0x305   :  { %v468_v34 = vpop.xlane.xlu0 %467 }
 0x306   :  { %1079 = vpow2.f32 %v492_v33  ;;  %v486_v35 = vsub.f32 %v432_v58, %v468_v34 }
 0x308   :  { %v496_v36 = vmul.f32 1.442695, %v486_v35 }
 0x309   :  { %v471_v37 = vpop.xlane.xlu0 %470  ;;  %v474_v38 = vpop.xlane.xlu1 %473 }
 0x30a   :  { %1081 = vpow2.f32 %v496_v36  ;;  %v487_v39 = vsub.f32 %v437_v61, %v471_v37  ;;  %v488_v40 = vsub.f32 %v442_v2, %v474_v38 }
 0x30c   :  { %v498_v41 = vmul.f32 1.442695, %v487_v39  ;;  %v500_v42 = vmul.f32 1.442695, %v488_v40 }
 0x30d   :  { %v477_v43 = vpop.xlane.xlu0 %476  ;;  %v480_v44 = vpop.xlane.xlu1 %479 }
 0x30e   :  { %1083 = vpow2.f32 %v498_v41  ;;  %v489_v45 = vsub.f32 %v447_v16, %v477_v43  ;;  %v490_v46 = vsub.f32 %v452_v23, %v480_v44  ;;  %v47_v43 = vld [vmem:[#allocation5 + $0x28] sm:$0xff] }
 0x30f   :  { %1085 = vpow2.f32 %v500_v42  ;;  %1054 = vmatprep.mubr.msk.f32.mxu0 %vm691_vm2, %v47_v43 }
 0x310   :  { %v502_v47 = vmul.f32 1.442695, %v489_v45  ;;  %v504_v48 = vmul.f32 1.442695, %v490_v46 }
 0x311   :  { %v1078_v49 = vpop.eup %1077  ;;  %v483_v50 = vpop.xlane.xlu0 %482 }
 0x312   :  { %1087 = vpow2.f32 %v502_v47  ;;  %v491_v51 = vsub.f32 %v457_v24, %v483_v50  ;;  %v511_v52 = vsel %vm167_vm1, %v1078_v49, 0.0 }
 0x313   :  { %v1080_v53 = vpop.eup %1079  ;;  %1089 = vpow2.f32 %v504_v48  ;;  %512 = vadd.xlane.f32.xlu0 %v511_v52 }
 0x314   :  { %v506_v54 = vmul.f32 1.442695, %v491_v51  ;;  %v508_v55 = vsel %vm167_vm1, %v1080_v53, 0.0 }
 0x315   :  { %509 = vadd.xlane.f32.xlu1 %v508_v55 }
 0x316   :  { %1091 = vpow2.f32 %v506_v54 }
 0x317   :  { %v1082_v56 = vpop.eup %1081 }
 0x318   :  { %v514_v57 = vsel %vm167_vm1, %v1082_v56, 0.0 }
 0x319   :  { %515 = vadd.xlane.f32.xlu1 %v514_v57 }
 0x31b   :  { %v1084_v58 = vpop.eup %1083 }
 0x31c   :  { %v1086_v59 = vpop.eup %1085  ;;  %v517_v60 = vsel %vm167_vm1, %v1084_v58, 0.0 }
 0x31d   :  { %518 = vadd.xlane.f32.xlu0 %v517_v60  ;;  %v520_v61 = vsel %vm167_vm1, %v1086_v59, 0.0 }
 0x31e   :  { %521 = vadd.xlane.f32.xlu1 %v520_v61 }
 0x31f   :  { %v1088_v62 = vpop.eup %1087 }
 0x320   :  { %v1090_v63 = vpop.eup %1089  ;;  %v523_v2 = vsel %vm167_vm1, %v1088_v62, 0.0 }
 0x321   :  { %524 = vadd.xlane.f32.xlu0 %v523_v2  ;;  %v526_v9 = vsel %vm167_vm1, %v1090_v63, 0.0 }
 0x322   :  { %527 = vadd.xlane.f32.xlu1 %v526_v9 }
 0x323   :  { %v1092_v14 = vpop.eup %1091 }
 0x324   :  { %v529_v16 = vsel %vm167_vm1, %v1092_v14, 0.0 }
 0x325   :  { %530 = vadd.xlane.f32.xlu0 %v529_v16 }
 0x333   :  { %550 = vrot.lane.b32.xlu1 %v1265_v18, %s1181_s21 }
 0x337   :  { %783 = vrot.lane.b32.xlu1 %v1211_v0, %s1182_s22 }
 0x33b   :  { %548 = vrot.lane.b32.xlu0 %v1268_v20, %s1181_s21  ;;  %781 = vrot.lane.b32.xlu1 %v1213_v1, %s1182_s22 }
 0x33f   :  { %779 = vrot.lane.b32.xlu0 %v1217_v3, %s1182_s22  ;;  %777 = vrot.lane.b32.xlu1 %v1228_v6, %s1182_s22 }
 0x343   :  { %790 = vrot.lane.b32.xlu0 %v1262_v15, %s1182_s22 }
 0x39c   :  { %v513_v19 = vpop.xlane.xlu0 %512 }
 0x39e   :  { %v510_v17 = vpop.xlane.xlu1 %509 }
 0x39f   :  { %1093 = vrcp.f32 %v510_v17 }
 0x3a0   :  { %1095 = vrcp.f32 %v513_v19 }
 0x3a2   :  { %v516_v21 = vpop.xlane.xlu1 %515 }
 0x3a3   :  { %1097 = vrcp.f32 %v516_v21 }
 0x3a6   :  { %v519_v22 = vpop.xlane.xlu0 %518 }
 0x3a7   :  { %1099 = vrcp.f32 %v519_v22  ;;  %v522_v23 = vpop.xlane.xlu1 %521 }
 0x3a8   :  { %1101 = vrcp.f32 %v522_v23 }
 0x3aa   :  { %v525_v24 = vpop.xlane.xlu0 %524 }
 0x3ab   :  { %1103 = vrcp.f32 %v525_v24  ;;  %v528_v25 = vpop.xlane.xlu1 %527 }
 0x3ac   :  { %v1094_v26 = vpop.eup %1093  ;;  %1105 = vrcp.f32 %v528_v25 }
 0x3ad   :  { %v540_v27 = vmul.f32 %v1094_v26, %v1080_v53  ;;  %v1096_v20 = vpop.eup %1095 }
 0x3ae   :  { %v531_v28 = vpop.xlane.xlu0 %530  ;;  %v541_v31 = vmul.f32 %v1096_v20, %v1078_v49 }
 0x3af   :  { %1107 = vrcp.f32 %v531_v28  ;;  %v551_v18 = vpop.permute.xlu1 %550  ;;  %1026 = vmatprep.mubr.msk.f32.mxu1 %vm167_vm1, %v540_v27 }
 0x3b0   :  { %1022 = vmatprep.subr.mxu1 %v551_v18  ;;  %v1098_v29 = vpop.eup %1097 }
 0x3b1   :  { %1023 = vmatpush3.msra.mxu1 %v551_v18  ;;  %v542_v33 = vmul.f32 %v1098_v29, %v1082_v56 }
 0x3b2   :  { %v549_v30 = vpop.permute.xlu0 %548 }
 0x3b3   :  { %1024 = vmatprep.subr.mxu1 %v549_v30  ;;  %v784_v3 = vpop.permute.xlu1 %783 }
 0x3b4   :  { %v1100_v32 = vpop.eup %1099  ;;  %1025 = vmatpush3.msra.mxu1 %v549_v30 }
 0x3b5   :  { %v1102_v34 = vpop.eup %1101  ;;  %1027 = vmatmul.mubr.msk.f32.vlgmr.msra.gmra.mxu1 %vm167_vm1, %v541_v31  ;;  %v543_v35 = vmul.f32 %v1100_v32, %v1084_v58  ;;  %1057 = vmatprep.subr.mxu1 %v784_v3 }
 0x3b6   :  { %1029 = vmatprep.mubr.msk.f32.mxu1 %vm167_vm1, %v542_v33  ;;  %v544_v37 = vmul.f32 %v1102_v34, %v1086_v59  ;;  %1058 = vmatpush3.msra.mxu1 %v784_v3  ;;  %v780_v53 = vpop.permute.xlu0 %779 }
 0x3b8   :  { %v1104_v36 = vpop.eup %1103 }
 0x3b9   :  { %v1106_v38 = vpop.eup %1105  ;;  %1030 = vmatmul.mubr.msk.f32.gmra.mxu1 %vm167_vm1, %v543_v35  ;;  %v545_v39 = vmul.f32 %v1104_v36, %v1088_v62 }
 0x3ba   :  { %1032 = vmatprep.mubr.msk.f32.mxu1 %vm167_vm1, %v544_v37  ;;  %v546_v41 = vmul.f32 %v1106_v38, %v1090_v63 }
 0x3bc   :  { %v1108_v40 = vpop.eup %1107 }
 0x3bd   :  { %1033 = vmatmul.mubr.msk.f32.gmra.mxu1 %vm167_vm1, %v545_v39  ;;  %v547_v42 = vmul.f32 %v1108_v40, %v1092_v14 }
 0x3be   :  { %1035 = vmatprep.mubr.msk.f32.mxu1 %vm167_vm1, %v546_v41 }
 0x3c1   :  { %1036 = vmatmul.mubr.msk.f32.gmra.mxu1 %vm167_vm1, %v547_v42 }
 0x475   :  { %v1028_v44 = vpop.f32.mrf.mxu1 }
 0x477   :  { %v644_v45 = vpop.f32.mrf.mxu1 }
 0x479   :  { %v1031_v46 = vpop.f32.mrf.mxu1 }
 0x47a   :  { %v686_v15 = vmul.f32 %v1031_v46, %v1235_v8  ;;  %v48_v8 = vld [vmem:[#allocation5 + $0x30] sm:$0xff] }
 0x47b   :  { %v654_v47 = vpop.f32.mrf.mxu1 }
 0x47d   :  { %v1034_v48 = vpop.f32.mrf.mxu1 }
 0x47e   :  { %v688_v1 = vmul.f32 %v1034_v48, %v1247_v11  ;;  %v684_v11 = vmul.f32 %v1028_v44, %v1232_v7  ;;  %v791_v7 = vpop.permute.xlu0 %790 }
 0x47f   :  { %v664_v49 = vpop.f32.mrf.mxu1 }
 0x480   :  { %v687_v6 = vmul.f32 %v664_v49, %v1244_v10  ;;  %v683_v10 = vmul.f32 %v644_v45, %v1220_v4 }
 0x481   :  { %v1037_v50 = vpop.f32.mrf.mxu1 }
 0x482   :  { %v690_v51 = vmul.f32 %v1037_v50, %v1255_v13  ;;  %v782_v13 = vpop.permute.xlu1 %781 }
 0x483   :  { %v674_v52 = vpop.f32.mrf.mxu1  ;;  %1059 = vmatprep.subr.mxu1 %v782_v13 }
 0x484   :  { %v689_v0 = vmul.f32 %v674_v52, %v1253_v12  ;;  %1038 = vmatprep.subr.mxu0 %v690_v51  ;;  %v685_v12 = vmul.f32 %v654_v47, %v1222_v5  ;;  %1060 = vmatpush3.msra.mxu1 %v782_v13 }
 0x485   :  { %1039 = vmatpush3.msra.mxu0 %v690_v51  ;;  %1061 = vmatprep.subr.mxu1 %v780_v53 }
 0x486   :  { %1040 = vmatprep.subr.mxu0 %v689_v0  ;;  %1062 = vmatpush3.msra.mxu1 %v780_v53  ;;  %v778_v5 = vpop.permute.xlu1 %777 }
 0x487   :  { %1041 = vmatpush3.msra.mxu0 %v689_v0  ;;  %1063 = vmatprep.subr.mxu1 %v778_v5 }
 0x488   :  { %1042 = vmatprep.subr.mxu0 %v688_v1  ;;  %1064 = vmatpush3.msra.mxu1 %v778_v5 }
 0x489   :  { %1043 = vmatpush3.msra.mxu0 %v688_v1 }
 0x48a   :  { %1044 = vmatprep.subr.mxu0 %v687_v6 }
 0x48b   :  { %1045 = vmatpush3.msra.mxu0 %v687_v6 }
 0x48c   :  { %1046 = vmatprep.subr.mxu0 %v686_v15 }
 0x48d   :  { %1047 = vmatpush3.msra.mxu0 %v686_v15 }
 0x48e   :  { %1048 = vmatprep.subr.mxu0 %v685_v12 }
 0x48f   :  { %1049 = vmatpush3.msra.mxu0 %v685_v12 }
 0x490   :  { %1050 = vmatprep.subr.mxu0 %v684_v11 }
 0x491   :  { %1051 = vmatpush3.msra.mxu0 %v684_v11 }
 0x492   :  { %1052 = vmatprep.subr.mxu0 %v683_v10 }
 0x493   :  { %1053 = vmatpush3.msra.mxu0 %v683_v10 }
 0x494   :  { %1055 = vmatmul.mubr.msk.f32.vlgmr.msra.gmra.mxu0 %vm691_vm2, %v48_v8 }
 0x554   :  { %v1056_v54 = vpop.f32.mrf.mxu0 }
 0x556   :  { %v764_v55 = vpop.f32.mrf.mxu0 }
 0x557   :  { %1065 = vmatprep.mubr.msk.f32.mxu1 %vm61_vm0, %v764_v55 }
 0x558   :  { %1066 = vmatmul.mubr.msk.f32.vlgmr.msra.gmra.mxu1 %vm61_vm0, %v1056_v54 }
 0x618   :  { %v1067_v56 = vpop.f32.mrf.mxu1 }
 0x619   :  { %v871_v4 = vadd.f32 %v1067_v56, %v791_v7 }
 0x61a   :  { %v865_v57 = vpop.f32.mrf.mxu1 }
 0x61b   :  { %875 = vst.msk [vmem:[#allocation7 + $0x8] sm:$0xff] %vm61_vm0, %v871_v4  ;;  %v866_v58 = vadd.f32 %v865_v57, %v791_v7 }
 0x61d   :  { %874 = vst.msk [vmem:[#allocation7] sm:$0xff] %vm61_vm0, %v866_v58 }
 0x61e   :  { %1160 = shalt.err (!%p1157_p0)
}
 0x61f   :  { %887 = dma.vmem_to_hbm [thread:$0]  %s882_s24, 256, %s1366_s2, [#allocation4], %s1176_s12, %s1176_s12, %s1177_s13  }
 0x620   :  { %1173 = dma.done.wait [#allocation4], 256  }
 0x621   :  { %1174 = vsyncadd [#allocation4], 4294967040 }
 0x622   :  { %891 = vsyncpa [#allocation3], 1 }
 0x623   :  { %892 = vsyncpa [#allocation6], 1 }
 0x624   :  { %893 = vsyncpa [#allocation4], 1 }

</bundles_post_ra>
